<compile_context>
chip_gen: v6e
topology: v6e:2x2x1
jax: 0.10.0
libtpu: 0.0.40
codegen_flags: <defaults>
</compile_context>

<pallas_src>
import jax
import jax.numpy as jnp
from jax.experimental import pallas as pl
from jax.experimental.pallas import tpu as pltpu

_LANE_CANDIDATES = (1024, 512, 256, 128)   # lane-dense widths (multiples of 128)
_TARGET_TILE_BYTES = 2 * 1024 * 1024       # ~2 MiB/tile; x2 refs x2 bufs ~= 8 MiB VMEM


def _sigmoid_kernel(x_ref, o_ref):
    # Elementwise sigmoid; lax.logistic keeps exp/recip on the EUP slot.
    o_ref[...] = jax.nn.sigmoid(x_ref[...])


def _sublane_multiple(dtype):
    # Native sublane packing: 8 rows for 32-bit, 16 for 16-bit, 32 for 8-bit.
    return max(8, 32 // jnp.dtype(dtype).itemsize)


def _run_slab(slab):
    """Run the sigmoid kernel over a lane-dense 2D slab (rows, lane)."""
    rows, lane = slab.shape
    itemsize = jnp.dtype(slab.dtype).itemsize
    sub = _sublane_multiple(slab.dtype)

    # Target ~2 MiB tiles, rows a multiple of the dtype's sublane packing.
    target_rows = max(sub, _TARGET_TILE_BYTES // (lane * itemsize))
    target_rows = (target_rows // sub) * sub

    if rows <= target_rows:
        block_rows = rows          # full array dim -> always a legal block shape
        grid = (1,)
    else:
        block_rows = target_rows   # sublane multiple; last partial block is masked
        grid = (pl.cdiv(rows, block_rows),)

    return pl.pallas_call(
        _sigmoid_kernel,
        out_shape=jax.ShapeDtypeStruct(slab.shape, slab.dtype),
        grid=grid,
        in_specs=[pl.BlockSpec((block_rows, lane), lambda i: (i, 0))],
        out_specs=pl.BlockSpec((block_rows, lane), lambda i: (i, 0)),
        compiler_params=pltpu.CompilerParams(
            dimension_semantics=("parallel",),
            vmem_limit_bytes=32 * 1024 * 1024,
        ),
    )(slab)


def myd_forward(x):
    """Reproduces MYD.forward: sigmoid(input), on an NCHW tensor."""
    orig_shape = x.shape
    total = x.size
    flat = x.reshape(-1)

    lane = next((c for c in _LANE_CANDIDATES if total % c == 0), None)
    if lane is not None:
        # Fast path: no padding, no output slice.  Reshapes of contiguous data
        # are free; Pallas masks any partial last row-block automatically.
        out = _run_slab(flat.reshape(total // lane, lane))
        return out.reshape(orig_shape)

    # Rare ragged fallback (element count not a multiple of 128): pad the tail
    # to the next 128-lane boundary only.  This costs one extra pad + slice
    # pass, but is only hit for tiny / oddly-sized tensors.
    lane = 128
    padded_total = pl.cdiv(total, lane) * lane
    padded = jnp.pad(flat, (0, padded_total - total))
    out = _run_slab(padded.reshape(padded_total // lane, lane))
    return out.reshape(-1)[:total].reshape(orig_shape)


if __name__ == "__main__":
    key = jax.random.PRNGKey(0)

    # 1) Mirror the script's preprocessing: input reshaped to (-1, 1, 2, 2).
    #    32 elements -> exercises the ragged (pad) fallback path.
    raw = jax.random.normal(key, (8, 4), dtype=jnp.float32)
    x_small = raw.reshape(-1, 1, 2, 2)            # -> (8, 1, 2, 2), NCHW
    y_small = myd_forward(x_small)
    jax.block_until_ready(y_small)
    ref_small = jax.nn.sigmoid(x_small)
    assert y_small.shape == x_small.shape
    assert jnp.allclose(y_small, ref_small, atol=1e-6), "small-case mismatch"

    # 2) Larger case: 5,120,000 elements = 5000 x 1024 lanes -> fast path,
    #    lane=1024, block_rows=512, grid=10 with a masked partial last block.
    key2 = jax.random.PRNGKey(1)
    raw2 = jax.random.normal(key2, (1_280_000, 4), dtype=jnp.float32)
    x_big = raw2.reshape(-1, 1, 2, 2)             # -> (1_280_000, 1, 2, 2)
    y_big = myd_forward(x_big)
    jax.block_until_ready(y_big)
    ref_big = jax.nn.sigmoid(x_big)
    assert y_big.shape == x_big.shape
    assert jnp.allclose(y_big, ref_big, atol=1e-6), "big-case mismatch"

    print("KERNEL_OK")
</pallas_src>

<mosaic_0001>
module attributes {stable_mosaic.version = 11 : i64} {
  func.func @_sigmoid_kernel(%arg0: i32, %arg1: memref<1x128xf32, #tpu.memory_space<vmem>>, %arg2: memref<1x128xf32, #tpu.memory_space<vmem>>) attributes {dimension_semantics = [#tpu.dimension_semantics<parallel>], iteration_bounds = array<i64: 1>, scalar_prefetch = 0 : i64, scratch_operands = 0 : i64, tpu.core_type = #tpu.core_type<tc>, window_params = [{transform_indices = @transform_0, window_bounds = array<i64: 1, 128>}, {transform_indices = @transform_1, window_bounds = array<i64: 1, 128>}]} {
    %c0 = arith.constant 0 : index
    %c0_0 = arith.constant 0 : index
    %0 = vector.load %arg1[%c0, %c0_0] : memref<1x128xf32, #tpu.memory_space<vmem>>, vector<1x128xf32>
    %1 = arith.negf %0 : vector<1x128xf32>
    %2 = math.exp %1 : vector<1x128xf32>
    %cst = arith.constant 1.000000e+00 : f32
    %3 = vector.broadcast %cst : f32 to vector<1x128xf32>
    %4 = arith.addf %3, %2 : vector<1x128xf32>
    %5 = arith.divf %3, %4 : vector<1x128xf32>
    %c0_1 = arith.constant 0 : index
    %c0_2 = arith.constant 0 : index
    %6 = vector.load %arg2[%c0_1, %c0_2] : memref<1x128xf32, #tpu.memory_space<vmem>>, vector<1x128xf32>
    tpu.vector_store %arg2[%c0_1, %c0_2], %5 {strides = array<i32>} : memref<1x128xf32, #tpu.memory_space<vmem>>, vector<1x128xf32>,
    return
  }
  func.func @transform_0(%arg0: i32) -> (i32, i32) {
    %c0_i32 = arith.constant 0 : i32
    %c0_i32_0 = arith.constant 0 : i32
    return %arg0, %c0_i32 : i32, i32
  }
  func.func @transform_1(%arg0: i32) -> (i32, i32) {
    %c0_i32 = arith.constant 0 : i32
    %c0_i32_0 = arith.constant 0 : i32
    return %arg0, %c0_i32 : i32, i32
  }
}

</mosaic_0001>

<bundles_post_ra>
// kernel: tpu_custom_call.1
= control target key start
LH: loop header
LB: loop body
LE: loop exit
PB: predicated region body
PF: predicated region fallthrough
CT: control target
= control target key end

     0   :  { %6 = vsyncpa [#allocation3], 0  ;;  %s113_s0 = inlined_call_operand.hbm [shape: f32[1,128], index: 0, kind: input, shape index: {}]   ;;  %s114_s1 = inlined_call_operand.hbm [shape: f32[1,128], index: 1, kind: output, shape index: {}]  }
   0x1   :  { %7 = vsyncpa [#allocation4], 0  ;;  %s95_s6 = smov [#allocation2]  }
   0x2   :  { %s14_s7 = sshll.u32 %s95_s6, 4  ;;  %s15_s7 = int_to_ptr.vmem [resolvable:$true] %s14_s7 }
   0x3   :  { %s59_s8 = scalar_lea.vmem %s15_s7, 16  ;;  %s63_s9 = scalar_lea.vmem %s15_s7, 32 }
   0x4   :  { %p60_p0 = scmp.ne.s32.totalorder %s15_s7, %s59_s8  ;;  %p64_p1 = scmp.lt.s32.totalorder %s15_s7, %s15_s7 }
   0x5   :  { %p65_p2 = scmp.lt.s32.totalorder %s63_s9, %s59_s8 }
   0x7   :  { %p66_p3 = por %p65_p2, %p64_p1 }
   0x9   :  { %p67_p4 = pnand %p66_p3, %p60_p0 }
   0xb   :  { %70 = shalt.err (!%p67_p4)
}
   0xc   :  { %17 = dma.hbm_to_vmem [thread:$0]  %s113_s0, 16, %s15_s7, [#allocation3]  }
   0xd   :  { %91 = dma.done.wait [#allocation3], 16  }
   0xe   :  { %92 = vsyncadd [#allocation3], 4294967280  ;;  %v21_v0 = vld [vmem:[#allocation2] sm:$0x1]  ;;  %s96_s12 = smov [#allocation5]  }
   0xf   :  { %v44_v1 = vmul.f32 -1.442695, %v21_v0  ;;  %s35_s13 = sshll.u32 %s96_s12, 4  ;;  %s36_s13 = int_to_ptr.vmem [resolvable:$true] %s35_s13 }
  0x10   :  { %s71_s14 = scalar_lea.vmem %s36_s13, 16  ;;  %s75_s15 = scalar_lea.vmem %s36_s13, 32 }
  0x11   :  { %47 = vpow2.f32 %v44_v1  ;;  %p72_p5 = scmp.ne.s32.totalorder %s36_s13, %s71_s14  ;;  %p76_p6 = scmp.lt.s32.totalorder %s36_s13, %s36_s13 }
  0x12   :  { %p77_p7 = scmp.lt.s32.totalorder %s75_s15, %s71_s14 }
  0x14   :  { %p78_p8 = por %p77_p7, %p76_p6 }
  0x16   :  { %p79_p9 = pnand %p78_p8, %p72_p5 }
  0x1e   :  { %v48_v2 = vpop.eup %47 }
  0x1f   :  { %v25_v3 = vadd.f32 1.0, %v48_v2 }
  0x21   :  { %49 = vrcp.f32 %v25_v3 }
  0x2e   :  { %v50_v4 = vpop.eup %49 }
  0x2f   :  { %28 = vst [vmem:[#allocation5] sm:$0x1] %v50_v4 }
  0x30   :  { %82 = shalt.err (!%p79_p9)
}
  0x31   :  { %38 = dma.vmem_to_hbm [thread:$0]  %s36_s13, 16, %s114_s1, [#allocation4]  }
  0x32   :  { %93 = dma.done.wait [#allocation4], 16  }
  0x33   :  { %94 = vsyncadd [#allocation4], 4294967280 }
  0x34   :  { %42 = vsyncpa [#allocation3], 1 }
  0x35   :  { %43 = vsyncpa [#allocation4], 1 }

</bundles_post_ra>
